<compile_context>
chip_gen: v6e
topology: v6e:2x2x1
jax: 0.10.0
libtpu: 0.0.40
codegen_flags: <defaults>
</compile_context>

<pallas_src>
import functools

import jax
import jax.numpy as jnp
from jax import lax
from jax.experimental import pallas as pl
from jax.experimental.pallas import tpu as pltpu


def _exp_warp_loss_kernel(w_ref, l_ref, r_ref, o_ref, acc_ref, *,
                          col, batch, tile_b, scale, mask_tail):
    i = pl.program_id(0)

    @pl.when(i == 0)
    def _():
        acc_ref[...] = jnp.zeros_like(acc_ref)

    # Upcast after the DMA (supports bf16 inputs with no extra HBM traffic).
    w = w_ref[...].astype(jnp.float32)
    l = l_ref[...].astype(jnp.float32)
    r = r_ref[...].astype(jnp.float32)

    # Both clamp(exp(.) - 1, 0) terms, computed on the full (tile_b, 2) block.
    loss = (jnp.maximum(jnp.exp(w - l) - 1.0, 0.0)
            + jnp.maximum(jnp.exp(r - w) - 1.0, 0.0))

    if mask_tail:
        # Last block is partial: out-of-bounds rows hold garbage (possibly
        # NaN/Inf after exp), so select them to 0 BEFORE accumulation.
        row = lax.broadcasted_iota(jnp.int32, loss.shape, 0)
        valid = (i * tile_b + row) < batch
        loss = jnp.where(valid, loss, 0.0)

    # Plain VPU adds per step — hides under the input DMA.
    acc_ref[...] += loss

    @pl.when(i == pl.num_programs(0) - 1)
    def _():
        # One-time: select the warp column (lane index == col), reduce, scale.
        lane = lax.broadcasted_iota(jnp.int32, acc_ref.shape, 1)
        sel = jnp.where(lane == col, acc_ref[...], 0.0)
        # scale = 0.5 / B  => (mean(loss_1) + mean(loss_2)) / 2.
        o_ref[0, 0] = jnp.sum(sel) * jnp.float32(scale)


def exp_warp_loss(warpless, lwarp, rwarp, target, *, yaw_warp, pitch_warp,
                  max_tile_rows=2048):
    """Pallas implementation of ExpWarpLoss.forward.

    warpless, lwarp, rwarp, target: (B, 2) float arrays (yaw, pitch) per sample.
    Exactly one of yaw_warp / pitch_warp must be > 0 (mirrors the torch asserts).
    """
    assert yaw_warp * pitch_warp == 0
    assert yaw_warp + pitch_warp > 0
    col = int(pitch_warp > 0)
    del target  # unused by the forward pass

    b, c = warpless.shape
    assert c == 2 and lwarp.shape == (b, c) and rwarp.shape == (b, c)

    # Sublane alignment: 8 rows for 32-bit, 16 for 16-bit, 32 for 8-bit dtypes.
    itemsize = jnp.dtype(warpless.dtype).itemsize
    row_align = 8 * max(1, 4 // itemsize)

    def round_up(x, m):
        return ((x + m - 1) // m) * m

    # Tile rows: as large as allowed, never more than the (aligned) batch, and
    # always a positive multiple of row_align (guards bad max_tile_rows values).
    tile_b = min(int(max_tile_rows), round_up(b, row_align))
    tile_b = max(row_align, (tile_b // row_align) * row_align)

    grid_steps = pl.cdiv(b, tile_b)
    mask_tail = (b % tile_b) != 0  # static: only emit tail masking if needed

    in_spec = pl.BlockSpec((tile_b, c), lambda i: (i, 0))
    kernel = functools.partial(
        _exp_warp_loss_kernel,
        col=col, batch=b, tile_b=tile_b, scale=0.5 / b, mask_tail=mask_tail)

    out = pl.pallas_call(
        kernel,
        out_shape=jax.ShapeDtypeStruct((1, 1), jnp.float32),
        grid_spec=pltpu.PrefetchScalarGridSpec(
            num_scalar_prefetch=0,
            grid=(grid_steps,),
            in_specs=[in_spec, in_spec, in_spec],
            out_specs=pl.BlockSpec(memory_space=pltpu.SMEM),
            scratch_shapes=[pltpu.VMEM((tile_b, c), jnp.float32)],
        ),
        compiler_params=pltpu.CompilerParams(
            dimension_semantics=("arbitrary",),
        ),
    )(warpless, lwarp, rwarp)
    return out[0, 0]


def _ref_loss(warpless, lwarp, rwarp, col):
    w, l, r = warpless[:, col], lwarp[:, col], rwarp[:, col]
    l1 = jnp.maximum(jnp.exp(w - l) - 1.0, 0.0)
    l2 = jnp.maximum(jnp.exp(r - w) - 1.0, 0.0)
    return (jnp.mean(l1) + jnp.mean(l2)) / 2.0


if __name__ == "__main__":
    key = jax.random.PRNGKey(0)

    # --- Small case (matches the module's intended use), pitch-warp column. ---
    B = 8
    k1, k2, k3, k4 = jax.random.split(key, 4)
    warpless = jax.random.normal(k1, (B, 2), dtype=jnp.float32)
    lwarp = jax.random.normal(k2, (B, 2), dtype=jnp.float32)
    rwarp = jax.random.normal(k3, (B, 2), dtype=jnp.float32)
    target = jax.random.normal(k4, (B, 2), dtype=jnp.float32)

    loss = exp_warp_loss(warpless, lwarp, rwarp, target, yaw_warp=0, pitch_warp=1)
    loss = jax.block_until_ready(loss)
    ref = _ref_loss(warpless, lwarp, rwarp, col=1)
    assert jnp.allclose(loss, ref, rtol=1e-5, atol=1e-6), (loss, ref)

    # --- Yaw-warp column on the same data. ---
    loss_y = exp_warp_loss(warpless, lwarp, rwarp, target, yaw_warp=1, pitch_warp=0)
    loss_y = jax.block_until_ready(loss_y)
    ref_y = _ref_loss(warpless, lwarp, rwarp, col=0)
    assert jnp.allclose(loss_y, ref_y, rtol=1e-5, atol=1e-6), (loss_y, ref_y)

    # --- Multi-step accumulator grid with a partial last block (B=600, tile=64). ---
    B2 = 600
    k5, k6, k7 = jax.random.split(k4, 3)
    wl2 = jax.random.normal(k5, (B2, 2), dtype=jnp.float32)
    lw2 = jax.random.normal(k6, (B2, 2), dtype=jnp.float32)
    rw2 = jax.random.normal(k7, (B2, 2), dtype=jnp.float32)
    loss2 = exp_warp_loss(wl2, lw2, rw2, wl2, yaw_warp=0, pitch_warp=1,
                          max_tile_rows=64)
    loss2 = jax.block_until_ready(loss2)
    ref2 = _ref_loss(wl2, lw2, rw2, col=1)
    assert jnp.allclose(loss2, ref2, rtol=1e-5, atol=1e-6), (loss2, ref2)

    # --- B not a multiple of 8: single block larger than the array + tail mask. ---
    B3 = 13
    k8, k9, k10 = jax.random.split(k7, 3)
    wl3 = jax.random.normal(k8, (B3, 2), dtype=jnp.float32)
    lw3 = jax.random.normal(k9, (B3, 2), dtype=jnp.float32)
    rw3 = jax.random.normal(k10, (B3, 2), dtype=jnp.float32)
    loss3 = exp_warp_loss(wl3, lw3, rw3, wl3, yaw_warp=1, pitch_warp=0)
    loss3 = jax.block_until_ready(loss3)
    ref3 = _ref_loss(wl3, lw3, rw3, col=0)
    assert jnp.allclose(loss3, ref3, rtol=1e-5, atol=1e-6), (loss3, ref3)

    print("KERNEL_OK")
</pallas_src>

<mosaic_0001>
module attributes {stable_mosaic.version = 11 : i64} {
  func.func @_exp_warp_loss_kernel(%arg0: i32, %arg1: memref<8x2xf32, #tpu.memory_space<vmem>>, %arg2: memref<8x2xf32, #tpu.memory_space<vmem>>, %arg3: memref<8x2xf32, #tpu.memory_space<vmem>>, %arg4: memref<1x1xf32, #tpu.memory_space<smem>>, %arg5: memref<8x2xf32, #tpu.memory_space<vmem>>) attributes {dimension_semantics = [#tpu.dimension_semantics<arbitrary>], iteration_bounds = array<i64: 1>, scalar_prefetch = 0 : i64, scratch_operands = 1 : i64, tpu.core_type = #tpu.core_type<tc>, window_params = [{transform_indices = @transform_0, window_bounds = array<i64: 8, 2>}, {transform_indices = @transform_1, window_bounds = array<i64: 8, 2>}, {transform_indices = @transform_2, window_bounds = array<i64: 8, 2>}, {transform_indices = @transform_3, window_bounds = array<i64: 1, 1>}]} {
    %c0_i32 = arith.constant 0 : i32
    %0 = arith.cmpi eq, %arg0, %c0_i32 : i32
    %1 = arith.extui %0 : i1 to i32
    %c0_i32_0 = arith.constant 0 : i32
    %2 = arith.cmpi ne, %1, %c0_i32_0 : i32
    scf.if %2 {
      %cst_15 = arith.constant 0.000000e+00 : f32
      %25 = vector.broadcast %cst_15 : f32 to vector<8x2xf32>
      %c0_16 = arith.constant 0 : index
      %c0_17 = arith.constant 0 : index
      %26 = vector.load %arg5[%c0_16, %c0_17] : memref<8x2xf32, #tpu.memory_space<vmem>>, vector<8x2xf32>
      tpu.vector_store %arg5[%c0_16, %c0_17], %25 {strides = array<i32>} : memref<8x2xf32, #tpu.memory_space<vmem>>, vector<8x2xf32>,
    } else {
    }
    %c0 = arith.constant 0 : index
    %c0_1 = arith.constant 0 : index
    %3 = vector.load %arg1[%c0, %c0_1] : memref<8x2xf32, #tpu.memory_space<vmem>>, vector<8x2xf32>
    %c0_2 = arith.constant 0 : index
    %c0_3 = arith.constant 0 : index
    %4 = vector.load %arg2[%c0_2, %c0_3] : memref<8x2xf32, #tpu.memory_space<vmem>>, vector<8x2xf32>
    %c0_4 = arith.constant 0 : index
    %c0_5 = arith.constant 0 : index
    %5 = vector.load %arg3[%c0_4, %c0_5] : memref<8x2xf32, #tpu.memory_space<vmem>>, vector<8x2xf32>
    %6 = arith.subf %3, %4 : vector<8x2xf32>
    %7 = math.exp %6 : vector<8x2xf32>
    %cst = arith.constant 1.000000e+00 : f32
    %8 = vector.broadcast %cst : f32 to vector<8x2xf32>
    %9 = arith.subf %7, %8 : vector<8x2xf32>
    %cst_6 = arith.constant 0.000000e+00 : f32
    %10 = vector.broadcast %cst_6 : f32 to vector<8x2xf32>
    %11 = arith.maximumf %9, %10 : vector<8x2xf32>
    %12 = arith.subf %5, %3 : vector<8x2xf32>
    %13 = math.exp %12 : vector<8x2xf32>
    %cst_7 = arith.constant 1.000000e+00 : f32
    %14 = vector.broadcast %cst_7 : f32 to vector<8x2xf32>
    %15 = arith.subf %13, %14 : vector<8x2xf32>
    %cst_8 = arith.constant 0.000000e+00 : f32
    %16 = vector.broadcast %cst_8 : f32 to vector<8x2xf32>
    %17 = arith.maximumf %15, %16 : vector<8x2xf32>
    %18 = arith.addf %11, %17 : vector<8x2xf32>
    %c0_9 = arith.constant 0 : index
    %c0_10 = arith.constant 0 : index
    %19 = vector.load %arg5[%c0_9, %c0_10] : memref<8x2xf32, #tpu.memory_space<vmem>>, vector<8x2xf32>
    %20 = arith.addf %19, %18 : vector<8x2xf32>
    %c0_11 = arith.constant 0 : index
    %c0_12 = arith.constant 0 : index
    %21 = vector.load %arg5[%c0_11, %c0_12] : memref<8x2xf32, #tpu.memory_space<vmem>>, vector<8x2xf32>
    tpu.vector_store %arg5[%c0_11, %c0_12], %20 {strides = array<i32>} : memref<8x2xf32, #tpu.memory_space<vmem>>, vector<8x2xf32>,
    %c0_i32_13 = arith.constant 0 : i32
    %22 = arith.cmpi eq, %arg0, %c0_i32_13 : i32
    %23 = arith.extui %22 : i1 to i32
    %c0_i32_14 = arith.constant 0 : i32
    %24 = arith.cmpi ne, %23, %c0_i32_14 : i32
    scf.if %24 {
      %25 = tpu.iota {dimensions = array<i32: 1>} : vector<8x2xi32>
      %c1_i32 = arith.constant 1 : i32
      %26 = vector.broadcast %c1_i32 : i32 to vector<8x2xi32>
      %27 = arith.cmpi eq, %25, %26 : vector<8x2xi32>
      %c0_15 = arith.constant 0 : index
      %c0_16 = arith.constant 0 : index
      %28 = vector.load %arg5[%c0_15, %c0_16] : memref<8x2xf32, #tpu.memory_space<vmem>>, vector<8x2xf32>
      %cst_17 = arith.constant 0.000000e+00 : f32
      %29 = vector.broadcast %cst_17 : f32 to vector<8x2xf32>
      %30 = arith.select %27, %28, %29 : vector<8x2xi1>, vector<8x2xf32>
      %31 = vector.shape_cast %30 : vector<8x2xf32> to vector<1x8x2xf32>
      %cst_18 = arith.constant dense<0.000000e+00> : vector<1xf32>
      %32 = vector.multi_reduction <add>, %31, %cst_18 [1, 2] : vector<1x8x2xf32> to vector<1xf32>
      %33 = vector.shape_cast %32 : vector<1xf32> to vector<1x1x1xf32>
      %34 = vector.extract %33[0, 0, 0] : f32 from vector<1x1x1xf32>
      %cst_19 = arith.constant 6.250000e-02 : f32
      %35 = arith.mulf %34, %cst_19 : f32
      %c0_20 = arith.constant 0 : index
      %c0_21 = arith.constant 0 : index
      %36 = memref.load %arg4[%c0_20, %c0_21] : memref<1x1xf32, #tpu.memory_space<smem>>
      memref.store %35, %arg4[%c0_20, %c0_21] : memref<1x1xf32, #tpu.memory_space<smem>>
    } else {
    }
    return
  }
  func.func @transform_0(%arg0: i32) -> (i32, i32) {
    %c0_i32 = arith.constant 0 : i32
    %c0_i32_0 = arith.constant 0 : i32
    return %arg0, %c0_i32 : i32, i32
  }
  func.func @transform_1(%arg0: i32) -> (i32, i32) {
    %c0_i32 = arith.constant 0 : i32
    %c0_i32_0 = arith.constant 0 : i32
    return %arg0, %c0_i32 : i32, i32
  }
  func.func @transform_2(%arg0: i32) -> (i32, i32) {
    %c0_i32 = arith.constant 0 : i32
    %c0_i32_0 = arith.constant 0 : i32
    return %arg0, %c0_i32 : i32, i32
  }
  func.func @transform_3(%arg0: i32) -> (i32, i32) {
    %c0_i32 = arith.constant 0 : i32
    %c0_i32_0 = arith.constant 0 : i32
    %c0_i32_1 = arith.constant 0 : i32
    return %c0_i32, %c0_i32_0 : i32, i32
  }
}

</mosaic_0001>

<bundles_post_ra>
// kernel: tpu_custom_call.1
= control target key start
LH: loop header
LB: loop body
LE: loop exit
PB: predicated region body
PF: predicated region fallthrough
CT: control target
= control target key end

     0   :  { %vm19_vm0 = vcmask 15360   ;;  %v93_v3 = vmov 0.0   ;;  %s130_s0 = inlined_call_operand.vmem [shape: f32[8,2], index: 0, kind: input, shape index: {}]   ;;  %s131_s1 = inlined_call_operand.vmem [shape: f32[8,2], index: 1, kind: input, shape index: {}]   ;;  %s132_s2 = inlined_call_operand.vmem [shape: f32[8,2], index: 2, kind: input, shape index: {}]   ;;  %s133_s3 = inlined_call_operand.hbm [shape: f32[1,1], index: 3, kind: output, shape index: {}]  }
   0x1   :  { %v21_v0 = vld [vmem:[%s130_s0] sm:$0xff]  ;;  %20 = vst.msk [vmem:[#allocation2] sm:$0xff] %vm19_vm0, %v93_v3 }
   0x2   :  { %v22_v1 = vld [vmem:[%s131_s1] sm:$0xff] }
   0x3   :  { %v23_v2 = vld [vmem:[%s132_s2] sm:$0xff]  ;;  %v24_v4 = vsub.f32 %v21_v0, %v22_v1 }
   0x4   :  { %v29_v5 = vsub.f32 %v23_v2, %v21_v0 }
   0x5   :  { %8 = vsyncpa [#allocation4], 0  ;;  %v25_v6 = vmul.f32 1.442695, %v24_v4  ;;  %v42_v16 = vlaneseq  ;;  %s94_s2 = smov [#allocation3]  }
   0x6   :  { %v30_v7 = vmul.f32 1.442695, %v29_v5 }
   0x7   :  { %79 = vpow2.f32 %v25_v6  ;;  %v43_v18 = vand.u32 127, %v42_v16 }
   0x8   :  { %81 = vpow2.f32 %v30_v7  ;;  %v35_v14 = vld [vmem:[#allocation2] sm:$0xff] }
   0x9   :  { %vm44_vm1 = vcmp.eq.s32.totalorder %v43_v18, 1 }
  0x14   :  { %v80_v8 = vpop.eup %79 }
  0x15   :  { %v82_v9 = vpop.eup %81  ;;  %v73_v10 = vadd.f32 -1.0, %v80_v8 }
  0x16   :  { %v74_v11 = vadd.f32 -1.0, %v82_v9 }
  0x17   :  { %v28_v12 = vmax.f32 %v73_v10, 0.0 }
  0x18   :  { %v33_v13 = vmax.f32 %v74_v11, 0.0 }
  0x1a   :  { %v34_v15 = vadd.f32 %v33_v13, %v28_v12 }
  0x1c   :  { %v36_v17 = vadd.f32 %v35_v14, %v34_v15 }
  0x1e   :  { %38 = vst.msk [vmem:[#allocation2] sm:$0xff] %vm19_vm0, %v36_v17 }
  0x25   :  { %v45_v19 = vld [vmem:[#allocation2] sm:$0xff] }
  0x26   :  { %v46_v20 = vsel %vm44_vm1, %v45_v19, 0.0 }
  0x27   :  { %v47_v21 = vsel %vm19_vm0, %v46_v20, 0.0 }
  0x28   :  { %48 = vadd.xlane.f32.xlu0 %v47_v21 }
  0xb1   :  { %v49_v22 = vpop.xlane.xlu0 %48 }
  0xb2   :  { %v50_v23 = vrot.slane %v49_v22, 4 }
  0xb4   :  { %v51_v24 = vadd.f32 %v50_v23, %v49_v22 }
  0xb6   :  { %v52_v25 = vrot.slane %v51_v24, 2 }
  0xb8   :  { %v53_v26 = vadd.f32 %v52_v25, %v51_v24 }
  0xba   :  { %v54_v27 = vrot.slane %v53_v26, 1 }
  0xbc   :  { %v55_v28 = vadd.f32 %v54_v27, %v53_v26 }
  0xbe   :  { %75 = vpush %v55_v28 }
  0xef   :  { %s76_s0 = spop %75 }
  0xf0   :  { %s57_s1 = smul.f32 0.0625, %s76_s0 }
  0xf2   :  { %59 = sst [smem:[#allocation3]] %s57_s1 }
  0xf3   :  { %67 = dma.smem_to_hbm %s94_s2, 16, %s133_s3, [#allocation4]  }
  0xf4   :  { %91 = dma.done.wait [#allocation4], 16  }
  0xf5   :  { %92 = vsyncadd [#allocation4], 4294967280 }
  0xf6   :  { %71 = sfence }
  0xf7   :  { %72 = vsyncpa [#allocation4], 1 }

</bundles_post_ra>
